<compile_context>
chip_gen: v6e
topology: v6e:2x2x1
jax: 0.10.0
libtpu: 0.0.40
codegen_flags: <defaults>
</compile_context>

<pallas_src>
import functools

import jax
import jax.numpy as jnp
from jax.experimental import pallas as pl
from jax.experimental.pallas import tpu as pltpu


def _embed_kernel(x_ref, w_ref, b_ref, o_ref, *, N, P, S):
    # x_ref: (1, S, Npad)  with x_ref[0, s, m] = x_pad[m*S + s]
    # w_ref: (tD, P)       conv weights (D, 1, P) -> (D, P), tiled on D
    # b_ref: (tD, 1)       bias
    # o_ref: (1, tD, N)    output tile, N (output positions) on the lane axis
    x = x_ref[0]                                   # (S, Npad)
    kj = -(-P // S)                                # ceil(P / S), static
    acc = None
    for j in range(kj):                            # static, small (P/S)
        taps = min(S, P - j * S)                   # static
        w_j = w_ref[:, j * S:j * S + taps]         # (tD, taps)
        # x_j[s, n] = x_pad[n*S + j*S + s]  -> tap p = j*S + s for position n
        x_j = x[:taps, j:j + N]                    # (taps, N) static slices
        d = jnp.dot(w_j, x_j, preferred_element_type=jnp.float32)
        acc = d if acc is None else acc + d
    o_ref[0] = (acc + b_ref[...]).astype(o_ref.dtype)


def _pick_tile_d(D, N, budget_elems=1 << 19):
    """Pick the D tile: divisor of D, multiple of 8 (or full D), ~<=2MiB f32/block."""
    cap = max(1, budget_elems // max(N, 1))
    if D <= cap:
        return D                                   # full dim block is always legal
    best = 0
    t = 8
    while t <= cap:
        if D % t == 0:
            best = t
        t += 8
    return best if best else D                     # fallback: full D block


@functools.partial(jax.jit, static_argnames=("P", "S"))
def embedding_forward(x, weight, bias, *, P=8, S=4):
    """x: (B, M, L); weight: (D, 1, P); bias: (D,) -> (B, M, D, N), N = L // S."""
    B, M, L = x.shape
    D = weight.shape[0]
    BM = B * M
    N = L // S
    kj = -(-P // S)              # ceil(P / S)
    Npad = N + kj - 1            # rows of the stride-reorganized input

    # ---- cheap, input-sized layout plumbing (no patch materialization) ----
    x_flat = x.reshape(BM, L)
    pad_len = P - S
    if pad_len > 0:              # replicate-pad right (matches F.pad mode='replicate')
        x_pad = jnp.concatenate(
            [x_flat, jnp.broadcast_to(x_flat[:, -1:], (BM, pad_len))], axis=1)
    else:
        x_pad = x_flat
    # Adjust to exactly Npad*S samples.  All *valid* taps (p < P) live within the
    # replicate-padded region; any extra pad / truncated tail is never used.
    target = Npad * S
    cur = x_pad.shape[1]
    if target > cur:
        x_pad = jnp.concatenate(
            [x_pad, jnp.broadcast_to(x_pad[:, -1:], (BM, target - cur))], axis=1)
    elif target < cur:
        x_pad = x_pad[:, :target]
    # x_rt[bm, s, m] = x_pad[bm, m*S + s]
    x_rt = x_pad.reshape(BM, Npad, S).transpose(0, 2, 1)      # (BM, S, Npad)

    w_mat = weight[:, 0, :]                                    # (D, P)
    bias2 = bias.reshape(D, 1)                                 # (D, 1)

    # ---- tiling ----
    tD = _pick_tile_d(D, N)
    nD = D // tD if (tD != D and D % tD == 0) else 1
    if tD == D:
        nD = 1
    grid = (BM, nD)

    out = pl.pallas_call(
        functools.partial(_embed_kernel, N=N, P=P, S=S),
        out_shape=jax.ShapeDtypeStruct((BM, D, N), x.dtype),
        grid_spec=pltpu.PrefetchScalarGridSpec(
            num_scalar_prefetch=0,
            grid=grid,
            in_specs=[
                # full (S, Npad) slab per bm; re-used across all D tiles
                pl.BlockSpec((1, S, Npad), lambda bm, di: (bm, 0, 0)),
                pl.BlockSpec((tD, P), lambda bm, di: (di, 0)),
                pl.BlockSpec((tD, 1), lambda bm, di: (di, 0)),
            ],
            # lane-dense output tile: last dim N (full), direct (BM, D, N) layout
            out_specs=pl.BlockSpec((1, tD, N), lambda bm, di: (bm, di, 0)),
        ),
        compiler_params=pltpu.CompilerParams(
            dimension_semantics=("parallel", "parallel")),
    )(x_rt, w_mat, bias2)

    # (BM, D, N) -> (B, M, D, N): pure reshape, no transpose / extra HBM pass.
    return out.reshape(B, M, D, N)
    # TODO(synk): optionally emit bf16 output (halves writeback) if downstream allows.


def _reference_forward(x, weight, bias, *, P=8, S=4):
    """Pure-JAX reference mirroring the PyTorch module."""
    B, M, L = x.shape
    D = weight.shape[0]
    N = L // S
    x_flat = x.reshape(B * M, L)
    x_pad = jnp.concatenate(
        [x_flat, jnp.broadcast_to(x_flat[:, -1:], (B * M, P - S))], axis=1)
    idx = jnp.arange(N)[:, None] * S + jnp.arange(P)[None, :]
    patches = x_pad[:, idx]                                    # (BM, N, P)
    w = weight[:, 0, :]                                        # (D, P)
    out = jnp.einsum("bnp,dp->bdn", patches, w) + bias[None, :, None]
    return out.reshape(B, M, D, N)


if __name__ == "__main__":
    def run_case(B, M, L, D, P, S, key):
        kx, kw, kb = jax.random.split(key, 3)
        x = jax.random.normal(kx, (B, M, L), dtype=jnp.float32)
        weight = jax.random.normal(kw, (D, 1, P), dtype=jnp.float32) * 0.1
        bias = jax.random.normal(kb, (D,), dtype=jnp.float32) * 0.1

        out = jax.block_until_ready(embedding_forward(x, weight, bias, P=P, S=S))
        ref = _reference_forward(x, weight, bias, P=P, S=S)
        assert out.shape == (B, M, D, L // S), out.shape
        assert jnp.allclose(out, ref, atol=1e-4, rtol=1e-4), float(
            jnp.max(jnp.abs(out - ref)))

    key = jax.random.PRNGKey(0)
    k1, k2 = jax.random.split(key)
    # Small deterministic shapes consistent with the module (D kept modest).
    run_case(B=2, M=4, L=16, D=128, P=8, S=4, key=k1)
    # Ragged L (not a multiple of S) and non-power-of-two D exercise the
    # pad/truncate path and full-D tiling.
    run_case(B=2, M=3, L=18, D=96, P=8, S=4, key=k2)

    print("KERNEL_OK")
</pallas_src>

<mosaic_0001>
module attributes {stable_mosaic.version = 11 : i64} {
  func.func @_embed_kernel(%arg0: i32, %arg1: i32, %arg2: memref<1x4x5xf32, #tpu.memory_space<vmem>>, %arg3: memref<128x8xf32, #tpu.memory_space<vmem>>, %arg4: memref<128x1xf32, #tpu.memory_space<vmem>>, %arg5: memref<1x128x4xf32, #tpu.memory_space<vmem>>) attributes {dimension_semantics = [#tpu.dimension_semantics<parallel>, #tpu.dimension_semantics<parallel>], iteration_bounds = array<i64: 8, 1>, scalar_prefetch = 0 : i64, scratch_operands = 0 : i64, tpu.core_type = #tpu.core_type<tc>, window_params = [{transform_indices = @transform_0, window_bounds = array<i64: 1, 4, 5>}, {transform_indices = @transform_1, window_bounds = array<i64: 128, 8>}, {transform_indices = @transform_2, window_bounds = array<i64: 128, 1>}, {transform_indices = @transform_3, window_bounds = array<i64: 1, 128, 4>}]} {
    %c0 = arith.constant 0 : index
    %c0_0 = arith.constant 0 : index
    %c0_1 = arith.constant 0 : index
    %0 = vector.load %arg2[%c0, %c0_0, %c0_1] : memref<1x4x5xf32, #tpu.memory_space<vmem>>, vector<1x4x5xf32>
    %1 = vector.shape_cast %0 : vector<1x4x5xf32> to vector<4x5xf32>
    %c0_2 = arith.constant 0 : index
    %c0_3 = arith.constant 0 : index
    %2 = vector.load %arg3[%c0_2, %c0_3] : memref<128x8xf32, #tpu.memory_space<vmem>>, vector<128x4xf32>
    %3 = vector.extract_strided_slice %1 {offsets = [0, 0], sizes = [4, 4], strides = [1, 1]} : vector<4x5xf32> to vector<4x4xf32>
    %cst = arith.constant dense<0.000000e+00> : vector<128x4xf32>
    %4 = tpu.matmul %2, %3, %cst {dimension_numbers = #tpu.dot_dimension_numbers<[1], [0], [0], [1], [0, 0, 1, 1], [], []>} : vector<128x4xf32>, vector<4x4xf32>, vector<128x4xf32> -> vector<128x4xf32>
    %c0_4 = arith.constant 0 : index
    %c4 = arith.constant 4 : index
    %5 = vector.load %arg3[%c0_4, %c4] : memref<128x8xf32, #tpu.memory_space<vmem>>, vector<128x4xf32>
    %6 = vector.extract_strided_slice %1 {offsets = [0, 1], sizes = [4, 4], strides = [1, 1]} : vector<4x5xf32> to vector<4x4xf32>
    %cst_5 = arith.constant dense<0.000000e+00> : vector<128x4xf32>
    %7 = tpu.matmul %5, %6, %cst_5 {dimension_numbers = #tpu.dot_dimension_numbers<[1], [0], [0], [1], [0, 0, 1, 1], [], []>} : vector<128x4xf32>, vector<4x4xf32>, vector<128x4xf32> -> vector<128x4xf32>
    %8 = arith.addf %4, %7 : vector<128x4xf32>
    %c0_6 = arith.constant 0 : index
    %c0_7 = arith.constant 0 : index
    %9 = vector.load %arg4[%c0_6, %c0_7] : memref<128x1xf32, #tpu.memory_space<vmem>>, vector<128x1xf32>
    %10 = vector.broadcast %9 : vector<128x1xf32> to vector<128x4xf32>
    %11 = arith.addf %8, %10 : vector<128x4xf32>
    %c0_8 = arith.constant 0 : index
    %c0_9 = arith.constant 0 : index
    %c0_10 = arith.constant 0 : index
    %12 = vector.load %arg5[%c0_8, %c0_9, %c0_10] : memref<1x128x4xf32, #tpu.memory_space<vmem>>, vector<1x128x4xf32>
    %13 = vector.shape_cast %12 : vector<1x128x4xf32> to vector<128x4xf32>
    %14 = vector.shape_cast %11 : vector<128x4xf32> to vector<1x128x4xf32>
    tpu.vector_store %arg5[%c0_8, %c0_9, %c0_10], %14 {strides = array<i32>} : memref<1x128x4xf32, #tpu.memory_space<vmem>>, vector<1x128x4xf32>,
    return
  }
  func.func @transform_0(%arg0: i32, %arg1: i32) -> (i32, i32, i32) {
    %c0_i32 = arith.constant 0 : i32
    %c0_i32_0 = arith.constant 0 : i32
    %c0_i32_1 = arith.constant 0 : i32
    return %arg0, %c0_i32, %c0_i32_0 : i32, i32, i32
  }
  func.func @transform_1(%arg0: i32, %arg1: i32) -> (i32, i32) {
    %c0_i32 = arith.constant 0 : i32
    %c0_i32_0 = arith.constant 0 : i32
    return %arg1, %c0_i32 : i32, i32
  }
  func.func @transform_2(%arg0: i32, %arg1: i32) -> (i32, i32) {
    %c0_i32 = arith.constant 0 : i32
    %c0_i32_0 = arith.constant 0 : i32
    return %arg1, %c0_i32 : i32, i32
  }
  func.func @transform_3(%arg0: i32, %arg1: i32) -> (i32, i32, i32) {
    %c0_i32 = arith.constant 0 : i32
    %c0_i32_0 = arith.constant 0 : i32
    return %arg0, %arg1, %c0_i32 : i32, i32, i32
  }
}

</mosaic_0001>

<bundles_post_ra>
// kernel: embedding_forward.1
= control target key start
LH: loop header
LB: loop body
LE: loop exit
PB: predicated region body
PF: predicated region fallthrough
CT: control target
= control target key end

     0   :  { %s1111_s12 = smov 0   ;;  %s1113_s13 = smov 0   ;;  %s1330_s0 = inlined_call_operand.vmem [shape: f32[8,4,5], index: 0, kind: input, shape index: {}]   ;;  %s1331_s1 = inlined_call_operand.vmem [shape: f32[128,8], index: 1, kind: input, shape index: {}]   ;;  %s1332_s2 = inlined_call_operand.vmem [shape: f32[128,1], index: 2, kind: input, shape index: {}]   ;;  %s1333_s3 = inlined_call_operand.vmem [shape: f32[8,128,4], index: 3, kind: output, shape index: {}]  }
   0x1   :  { %s1115_s14 = smov 0  }
   0x2 LB: > { %s25_s15 = sadd.s32 1, %s1082_s13  ;;  %p908_p0 = scmp.ge.s32.totalorder %s1086_s14, 1  ;;  %s1086_s14 = sphi %s1115_s14, %s13_s14   ;;  %s1082_s13 = sphi %s1113_s13, %s1335_s13   ;;  %s1078_s12 = sphi %s1111_s12, %s1334_s12  }
   0x3   : > { %p27_p1 = scmp.ge.s32.totalorder %s25_s15, 8  ;;  %p172_p2 = scmp.lt.s32.totalorder %s1086_s14, 9 }
   0x5   : > { %s1337_s15 = smov (%p27_p1, %s25_s15), 0  ;;  %p173_p3 = pnand %p908_p0, %p172_p2 }
   0x6   : > { %p209_p4 = scmp.lt.s32.totalorder (!%p173_p3), %s1078_s12, 7  ;;  %s1088_s20 = smov (!%p173_p3), 124  }
   0x7   : > { %176 = sbr.rel (%p173_p3) target bundleno = 364 (0x16c), region = 32  ;;  %s1089_s27 = smov (!%p173_p3), 127  }
   0xc   : > { %v237_v0 = vld [vmem:[%s1331_s1 + $0x8] sm:$0xff]  ;;  %v236_v1 = vld [vmem:[%s1331_s1] sm:$0xff]  ;;  %vm303_vm0 = vcmask 31744   ;;  %s1339_s12 = smov (!%p209_p4, %s1078_s12), 7  ;;  %v238_v2 = vld [vmem:[%s1331_s1 + $0x10] sm:$0xff]  ;;  %vm336_vm1 = vcmask 1043456  }
   0xd   : > { %270 = vrot.lane.b32.xlu1 %v237_v0, %s1088_s20  ;;  %1011 = vmatprep.mubr.msk.f32.mxu1 %vm303_vm0, %v236_v1  ;;  %s909_s23 = sshll.u32 %s1339_s12, 2  ;;  %v240_v4 = vld [vmem:[%s1331_s1 + $0x20] sm:$0xff]  ;;  %v242_v5 = vld [vmem:[%s1331_s1 + $0x30] sm:$0xff]  ;;  %v239_v6 = vld [vmem:[%s1331_s1 + $0x18] sm:$0xff]  ;;  %v1090_v15 = vmov 0   ;;  %s948_s18 = sshll.u32 %s1339_s12, 7 }
   0xe   : > { %s212_s26 = scalar_lea.vmem %s1330_s0, %s909_s23  ;;  %v244_v7 = vld [vmem:[%s1331_s1 + $0x40] sm:$0xff]  ;;  %v241_v8 = vld [vmem:[%s1331_s1 + $0x28] sm:$0xff]  ;;  %v246_v9 = vld [vmem:[%s1331_s1 + $0x50] sm:$0xff]  ;;  %1062 = vset.pattern.permute.xlu1 %v1090_v15  ;;  %1063 = vset.pattern.permute.xlu0 %v1090_v15 }
   0xf   : > { %v235_v3 = vld [vmem:[%s212_s26] sm:$0xf]  ;;  %v243_v10 = vld [vmem:[%s1331_s1 + $0x38] sm:$0xff]  ;;  %v245_v12 = vld [vmem:[%s1331_s1 + $0x48] sm:$0xff] }
  0x10   : > { %301 = vrot.lane.b32.xlu0 %v235_v3, %s1089_s27  ;;  %1009 = vmatprep.subr.msk.mxu1 %vm336_vm1, %v235_v3  ;;  %v248_v11 = vld [vmem:[%s1331_s1 + $0x60] sm:$0xff]  ;;  %v250_v13 = vld [vmem:[%s1331_s1 + $0x70] sm:$0xff]  ;;  %v247_v14 = vld [vmem:[%s1331_s1 + $0x58] sm:$0xff] }
  0x11   : > { %272 = vrot.lane.b32.xlu1 %v238_v2, %s1088_s20  ;;  %1010 = vmatpush3.msk.msra.mxu1 %vm336_vm1, %v235_v3  ;;  %v663_v16 = vld [vmem:[%s1332_s2] sm:$0xff]  ;;  %v249_v17 = vld [vmem:[%s1331_s1 + $0x68] sm:$0xff]  ;;  %v665_v18 = vld [vmem:[%s1332_s2 + $0x10] sm:$0xff] }
  0x12   : > { %1012 = vmatmul.mubr.msk.f32.vlgmr.msra.gmra.mxu1 %vm303_vm0, %v237_v0  ;;  %v251_v19 = vld [vmem:[%s1331_s1 + $0x78] sm:$0xff]  ;;  %v664_v21 = vld [vmem:[%s1332_s2 + $0x8] sm:$0xff]  ;;  %v667_v23 = vld [vmem:[%s1332_s2 + $0x20] sm:$0xff] }
  0x13   : > { %1014 = vmatprep.mubr.msk.f32.mxu1 %vm303_vm0, %v238_v2  ;;  %v666_v20 = vld [vmem:[%s1332_s2 + $0x18] sm:$0xff]  ;;  %v668_v22 = vld [vmem:[%s1332_s2 + $0x28] sm:$0xff]  ;;  %v669_v25 = vld [vmem:[%s1332_s2 + $0x30] sm:$0xff] }
  0x14   : > { %268 = vrot.lane.b32.xlu0 %v236_v1, %s1088_s20  ;;  %v670_v24 = vld [vmem:[%s1332_s2 + $0x38] sm:$0xff]  ;;  %v672_v26 = vld [vmem:[%s1332_s2 + $0x48] sm:$0xff]  ;;  %v671_v27 = vld [vmem:[%s1332_s2 + $0x40] sm:$0xff] }
  0x15   : > { %276 = vrot.lane.b32.xlu1 %v240_v4, %s1088_s20  ;;  %v674_v28 = vld [vmem:[%s1332_s2 + $0x58] sm:$0xff]  ;;  %v673_v29 = vld [vmem:[%s1332_s2 + $0x50] sm:$0xff]  ;;  %v676_v30 = vld [vmem:[%s1332_s2 + $0x68] sm:$0xff] }
  0x16   : > { %1015 = vmatmul.mubr.msk.f32.gmra.mxu1 %vm303_vm0, %v239_v6  ;;  %v675_v31 = vld [vmem:[%s1332_s2 + $0x60] sm:$0xff]  ;;  %v678_v32 = vld [vmem:[%s1332_s2 + $0x78] sm:$0xff]  ;;  %v677_v33 = vld [vmem:[%s1332_s2 + $0x70] sm:$0xff] }
  0x17   : > { %1017 = vmatprep.mubr.msk.f32.mxu1 %vm303_vm0, %v240_v4 }
  0x18   : > { %274 = vrot.lane.b32.xlu0 %v239_v6, %s1088_s20 }
  0x19   : > { %280 = vrot.lane.b32.xlu1 %v242_v5, %s1088_s20 }
  0x1a   : > { %1018 = vmatmul.mubr.msk.f32.gmra.mxu1 %vm303_vm0, %v241_v8 }
  0x1b   : > { %1020 = vmatprep.mubr.msk.f32.mxu1 %vm303_vm0, %v242_v5 }
  0x1c   : > { %278 = vrot.lane.b32.xlu0 %v241_v8, %s1088_s20 }
  0x1d   : > { %284 = vrot.lane.b32.xlu1 %v244_v7, %s1088_s20 }
  0x1e   : > { %1021 = vmatmul.mubr.msk.f32.gmra.mxu1 %vm303_vm0, %v243_v10 }
  0x1f   : > { %1023 = vmatprep.mubr.msk.f32.mxu1 %vm303_vm0, %v244_v7 }
  0x20   : > { %282 = vrot.lane.b32.xlu0 %v243_v10, %s1088_s20 }
  0x21   : > { %288 = vrot.lane.b32.xlu1 %v246_v9, %s1088_s20 }
  0x22   : > { %1024 = vmatmul.mubr.msk.f32.gmra.mxu1 %vm303_vm0, %v245_v12 }
  0x23   : > { %1026 = vmatprep.mubr.msk.f32.mxu1 %vm303_vm0, %v246_v9 }
  0x24   : > { %286 = vrot.lane.b32.xlu0 %v245_v12, %s1088_s20 }
  0x25   : > { %292 = vrot.lane.b32.xlu1 %v248_v11, %s1088_s20 }
  0x26   : > { %1027 = vmatmul.mubr.msk.f32.gmra.mxu1 %vm303_vm0, %v247_v14 }
  0x27   : > { %1029 = vmatprep.mubr.msk.f32.mxu1 %vm303_vm0, %v248_v11 }
  0x28   : > { %290 = vrot.lane.b32.xlu0 %v247_v14, %s1088_s20 }
  0x29   : > { %296 = vrot.lane.b32.xlu1 %v250_v13, %s1088_s20 }
  0x2a   : > { %1030 = vmatmul.mubr.msk.f32.gmra.mxu1 %vm303_vm0, %v249_v17 }
  0x2b   : > { %1032 = vmatprep.mubr.msk.f32.mxu1 %vm303_vm0, %v250_v13 }
  0x2c   : > { %294 = vrot.lane.b32.xlu0 %v249_v17, %s1088_s20 }
  0x2d   : > { %681 = vperm.xlu1 %1062, %v663_v16  }
  0x2e   : > { %1033 = vmatmul.mubr.msk.f32.gmra.mxu1 %vm303_vm0, %v251_v19 }
  0x30   : > { %298 = vrot.lane.b32.xlu0 %v251_v19, %s1088_s20  ;;  %s1287_s20 = scalar_lea.vmem %s1333_s3, %s948_s18 }
  0x31   : > { %691 = vperm.xlu1 %1062, %v665_v18  }
  0x34   : > { %686 = vperm.xlu0 %1063, %v664_v21  }
  0x35   : > { %696 = vperm.xlu1 %1062, %v666_v20  }
  0x38   : > { %701 = vperm.xlu0 %1063, %v667_v23  }
  0x39   : > { %706 = vperm.xlu1 %1062, %v668_v22  }
  0x3c   : > { %711 = vperm.xlu0 %1063, %v669_v25  }
  0x3d   : > { %716 = vperm.xlu1 %1062, %v670_v24  }
  0x40   : > { %721 = vperm.xlu0 %1063, %v671_v27  }
  0x41   : > { %726 = vperm.xlu1 %1062, %v672_v26  }
  0x44   : > { %731 = vperm.xlu0 %1063, %v673_v29  }
  0x45   : > { %736 = vperm.xlu1 %1062, %v674_v28  }
  0x48   : > { %741 = vperm.xlu0 %1063, %v675_v31  }
  0x49   : > { %746 = vperm.xlu1 %1062, %v676_v30  }
  0x4c   : > { %751 = vperm.xlu0 %1063, %v677_v33  }
  0x4d   : > { %756 = vperm.xlu1 %1062, %v678_v32  }
  0x7f   : > { %v271_v34 = vpop.permute.xlu1 %270 }
  0x82   : > { %v302_v36 = vpop.permute.xlu0 %301 }
  0x83   : > { %v273_v35 = vpop.permute.xlu1 %272  ;;  %983 = vmatprep.subr.msk.mxu0 %vm336_vm1, %v302_v36 }
  0x84   : > { %984 = vmatpush3.msk.msra.mxu0 %vm336_vm1, %v302_v36 }
  0x86   : > { %v269_v38 = vpop.permute.xlu0 %268 }
  0x87   : > { %v277_v37 = vpop.permute.xlu1 %276  ;;  %985 = vmatprep.mubr.msk.f32.mxu0 %vm303_vm0, %v269_v38 }
  0x88   : > { %986 = vmatmul.mubr.msk.f32.vlgmr.msra.gmra.mxu0 %vm303_vm0, %v271_v34 }
  0x89   : > { %988 = vmatprep.mubr.msk.f32.mxu0 %vm303_vm0, %v273_v35 }
  0x8a   : > { %v275_v40 = vpop.permute.xlu0 %274 }
  0x8b   : > { %v281_v39 = vpop.permute.xlu1 %280 }
  0x8c   : > { %989 = vmatmul.mubr.msk.f32.gmra.mxu0 %vm303_vm0, %v275_v40 }
  0x8d   : > { %991 = vmatprep.mubr.msk.f32.mxu0 %vm303_vm0, %v277_v37 }
  0x8e   : > { %v279_v42 = vpop.permute.xlu0 %278 }
  0x8f   : > { %v285_v41 = vpop.permute.xlu1 %284 }
  0x90   : > { %992 = vmatmul.mubr.msk.f32.gmra.mxu0 %vm303_vm0, %v279_v42 }
  0x91   : > { %994 = vmatprep.mubr.msk.f32.mxu0 %vm303_vm0, %v281_v39 }
  0x92   : > { %v283_v43 = vpop.permute.xlu0 %282 }
  0x93   : > { %v289_v44 = vpop.permute.xlu1 %288 }
  0x94   : > { %995 = vmatmul.mubr.msk.f32.gmra.mxu0 %vm303_vm0, %v283_v43 }
  0x95   : > { %997 = vmatprep.mubr.msk.f32.mxu0 %vm303_vm0, %v285_v41 }
  0x96   : > { %v287_v45 = vpop.permute.xlu0 %286 }
  0x97   : > { %v293_v46 = vpop.permute.xlu1 %292 }
  0x98   : > { %998 = vmatmul.mubr.msk.f32.gmra.mxu0 %vm303_vm0, %v287_v45 }
  0x99   : > { %1000 = vmatprep.mubr.msk.f32.mxu0 %vm303_vm0, %v289_v44 }
  0x9a   : > { %v291_v47 = vpop.permute.xlu0 %290 }
  0x9b   : > { %v297_v49 = vpop.permute.xlu1 %296 }
  0x9c   : > { %1001 = vmatmul.mubr.msk.f32.gmra.mxu0 %vm303_vm0, %v291_v47 }
  0x9d   : > { %1003 = vmatprep.mubr.msk.f32.mxu0 %vm303_vm0, %v293_v46 }
  0x9e   : > { %v295_v48 = vpop.permute.xlu0 %294 }
  0xa0   : > { %1004 = vmatmul.mubr.msk.f32.gmra.mxu0 %vm303_vm0, %v295_v48 }
  0xa1   : > { %1006 = vmatprep.mubr.msk.f32.mxu0 %vm303_vm0, %v297_v49 }
  0xa2   : > { %v299_v50 = vpop.permute.xlu0 %298 }
  0xa4   : > { %1007 = vmatmul.mubr.msk.f32.gmra.mxu0 %vm303_vm0, %v299_v50 }
  0xa8   : > { %v682_v54 = vpop.permute.xlu1 %681 }
  0xac   : > { %v692_v57 = vpop.permute.xlu1 %691 }
  0xaf   : > { %v687_v61 = vpop.permute.xlu0 %686 }
  0xb0   : > { %v697_v59 = vpop.permute.xlu1 %696 }
  0xb3   : > { %v702_v1 = vpop.permute.xlu0 %701 }
  0xb4   : > { %v707_v63 = vpop.permute.xlu1 %706 }
  0xb7   : > { %v712_v13 = vpop.permute.xlu0 %711 }
  0xb8   : > { %v717_v8 = vpop.permute.xlu1 %716 }
  0xbb   : > { %v722_v25 = vpop.permute.xlu0 %721 }
  0xbc   : > { %v727_v21 = vpop.permute.xlu1 %726 }
  0xbf   : > { %v732_v38 = vpop.permute.xlu0 %731 }
  0xc0   : > { %v737_v33 = vpop.permute.xlu1 %736 }
  0xc3   : > { %v742_v50 = vpop.permute.xlu0 %741 }
  0xc4   : > { %v747_v46 = vpop.permute.xlu1 %746 }
  0xd2   : > { %v1013_v51 = vpop.f32.mrf.mxu1 }
  0xd4   : > { %v584_v52 = vpop.f32.mrf.mxu1 }
  0xd6   : > { %v1016_v53 = vpop.f32.mrf.mxu1 }
  0xd8   : > { %v594_v55 = vpop.f32.mrf.mxu1 }
  0xda   : > { %v1019_v56 = vpop.f32.mrf.mxu1 }
  0xdc   : > { %v604_v58 = vpop.f32.mrf.mxu1 }
  0xde   : > { %v1022_v60 = vpop.f32.mrf.mxu1 }
  0xe0   : > { %v614_v62 = vpop.f32.mrf.mxu1 }
  0xe2   : > { %v1025_v4 = vpop.f32.mrf.mxu1 }
  0xe4   : > { %v624_v12 = vpop.f32.mrf.mxu1 }
  0xe6   : > { %v1028_v20 = vpop.f32.mrf.mxu1 }
  0xe8   : > { %v634_v29 = vpop.f32.mrf.mxu1 }
  0xea   : > { %v1031_v37 = vpop.f32.mrf.mxu1 }
  0xec   : > { %v644_v45 = vpop.f32.mrf.mxu1 }
 0x148   : > { %v987_v0 = vpop.f32.mrf.mxu0 }
 0x149   : > { %v590_v2 = vadd.f32 %v1013_v51, %v987_v0 }
 0x14a   : > { %v405_v3 = vpop.f32.mrf.mxu0 }
 0x14b   : > { %v760_v5 = vadd.f32 %v687_v61, %v590_v2  ;;  %v585_v6 = vadd.f32 %v584_v52, %v405_v3 }
 0x14c   : > { %v990_v7 = vpop.f32.mrf.mxu0 }
 0x14d   : > { %776 = vst.msk [vmem:[%s1287_s20 + $0x8] sm:$0xff] %vm303_vm0, %v760_v5  ;;  %v759_v9 = vadd.f32 %v682_v54, %v585_v6  ;;  %v600_v10 = vadd.f32 %v1016_v53, %v990_v7  ;;  %v1034_v54 = vpop.f32.mrf.mxu1 }
 0x14e   : > { %v415_v11 = vpop.f32.mrf.mxu0 }
 0x14f   : > { %775 = vst.msk [vmem:[%s1287_s20] sm:$0xff] %vm303_vm0, %v759_v9  ;;  %v762_v14 = vadd.f32 %v697_v59, %v600_v10  ;;  %v595_v15 = vadd.f32 %v594_v55, %v415_v11  ;;  %v654_v61 = vpop.f32.mrf.mxu1 }
 0x150   : > { %v993_v16 = vpop.f32.mrf.mxu0 }
 0x151   : > { %778 = vst.msk [vmem:[%s1287_s20 + $0x18] sm:$0xff] %vm303_vm0, %v762_v14  ;;  %v761_v17 = vadd.f32 %v692_v57, %v595_v15  ;;  %v610_v18 = vadd.f32 %v1019_v56, %v993_v16 }
 0x152   : > { %v425_v19 = vpop.f32.mrf.mxu0 }
 0x153   : > { %777 = vst.msk [vmem:[%s1287_s20 + $0x10] sm:$0xff] %vm303_vm0, %v761_v17  ;;  %v764_v22 = vadd.f32 %v707_v63, %v610_v18  ;;  %v605_v23 = vadd.f32 %v604_v58, %v425_v19  ;;  %v757_v58 = vpop.permute.xlu1 %756 }
 0x154   : > { %v996_v24 = vpop.f32.mrf.mxu0 }
 0x155   : > { %780 = vst.msk [vmem:[%s1287_s20 + $0x28] sm:$0xff] %vm303_vm0, %v764_v22  ;;  %v763_v26 = vadd.f32 %v702_v1, %v605_v23  ;;  %v620_v27 = vadd.f32 %v1022_v60, %v996_v24  ;;  %v752_v1 = vpop.permute.xlu0 %751 }
 0x156   : > { %v435_v28 = vpop.f32.mrf.mxu0 }
 0x157   : > { %779 = vst.msk [vmem:[%s1287_s20 + $0x20] sm:$0xff] %vm303_vm0, %v763_v26  ;;  %v766_v30 = vadd.f32 %v717_v8, %v620_v27  ;;  %v615_v31 = vadd.f32 %v614_v62, %v435_v28 }
 0x158   : > { %v999_v32 = vpop.f32.mrf.mxu0 }
 0x159   : > { %782 = vst.msk [vmem:[%s1287_s20 + $0x38] sm:$0xff] %vm303_vm0, %v766_v30  ;;  %v765_v34 = vadd.f32 %v712_v13, %v615_v31  ;;  %v630_v35 = vadd.f32 %v1025_v4, %v999_v32 }
 0x15a   : > { %v445_v36 = vpop.f32.mrf.mxu0 }
 0x15b   : > { %781 = vst.msk [vmem:[%s1287_s20 + $0x30] sm:$0xff] %vm303_vm0, %v765_v34  ;;  %v768_v39 = vadd.f32 %v727_v21, %v630_v35  ;;  %v625_v40 = vadd.f32 %v624_v12, %v445_v36 }
 0x15c   : > { %v1002_v41 = vpop.f32.mrf.mxu0 }
 0x15d   : > { %784 = vst.msk [vmem:[%s1287_s20 + $0x48] sm:$0xff] %vm303_vm0, %v768_v39  ;;  %v767_v42 = vadd.f32 %v722_v25, %v625_v40  ;;  %v640_v43 = vadd.f32 %v1028_v20, %v1002_v41 }
 0x15e   : > { %v455_v44 = vpop.f32.mrf.mxu0 }
 0x15f   : > { %783 = vst.msk [vmem:[%s1287_s20 + $0x40] sm:$0xff] %vm303_vm0, %v767_v42  ;;  %v770_v47 = vadd.f32 %v737_v33, %v640_v43  ;;  %v635_v48 = vadd.f32 %v634_v29, %v455_v44 }
 0x160   : > { %v1005_v49 = vpop.f32.mrf.mxu0 }
 0x161   : > { %786 = vst.msk [vmem:[%s1287_s20 + $0x58] sm:$0xff] %vm303_vm0, %v770_v47  ;;  %v769_v51 = vadd.f32 %v732_v38, %v635_v48  ;;  %v650_v52 = vadd.f32 %v1031_v37, %v1005_v49 }
 0x162   : > { %v465_v53 = vpop.f32.mrf.mxu0 }
 0x163   : > { %785 = vst.msk [vmem:[%s1287_s20 + $0x50] sm:$0xff] %vm303_vm0, %v769_v51  ;;  %v772_v55 = vadd.f32 %v747_v46, %v650_v52  ;;  %v645_v56 = vadd.f32 %v644_v45, %v465_v53 }
 0x164   : > { %v1008_v57 = vpop.f32.mrf.mxu0 }
 0x165   : > { %788 = vst.msk [vmem:[%s1287_s20 + $0x68] sm:$0xff] %vm303_vm0, %v772_v55  ;;  %v771_v59 = vadd.f32 %v742_v50, %v645_v56  ;;  %v660_v60 = vadd.f32 %v1034_v54, %v1008_v57 }
 0x166   : > { %v475_v62 = vpop.f32.mrf.mxu0 }
 0x167   : > { %787 = vst.msk [vmem:[%s1287_s20 + $0x60] sm:$0xff] %vm303_vm0, %v771_v59  ;;  %v774_v63 = vadd.f32 %v757_v58, %v660_v60  ;;  %v655_v0 = vadd.f32 %v654_v61, %v475_v62 }
 0x169   : > { %790 = vst.msk [vmem:[%s1287_s20 + $0x78] sm:$0xff] %vm303_vm0, %v774_v63  ;;  %v773_v2 = vadd.f32 %v752_v1, %v655_v0 }
 0x16b   : > { %789 = vst.msk [vmem:[%s1287_s20 + $0x70] sm:$0xff] %vm303_vm0, %v773_v2 }
 0x16c PF: > { %s13_s14 = sadd.s32 1, %s1086_s14   ;;  %s1334_s12 = smov %s1082_s13 }
 0x16d   : > { %p10_p5 = scmp.ge.s32.totalorder %s13_s14, 10   ;;  %s1335_s13 = smov %s1337_s15 }
 0x16f   :  { %12 = sbr.rel (!%p10_p5) target bundleno = 2 (0x2), region = 68 }

</bundles_post_ra>
